<compile_context>
chip_gen: v6e
topology: v6e:2x2x1
jax: 0.10.0
libtpu: 0.0.40
codegen_flags: <defaults>
</compile_context>

<pallas_src>
import jax
import jax.numpy as jnp
from jax.experimental import pallas as pl
from jax.experimental.pallas import tpu as pltpu


# ---------------------------------------------------------------------------
# Kernel
# ---------------------------------------------------------------------------

def _make_kernel(use_bf16_matmul):
    def kernel(x_ref, p_ref, o_ref):
        x = x_ref[...]                                # (tb, D) row tile (ragged tail masked)
        p = p_ref[...]                                # (D, D), VMEM-resident, single-buffered
        if use_bf16_matmul:
            # Numerics trade-off: ~3x MXU throughput at large D (bf16 inputs, f32 accumulate).
            y = jnp.dot(x.astype(jnp.bfloat16), p.astype(jnp.bfloat16),
                        preferred_element_type=jnp.float32)
        else:
            y = jnp.dot(x, p, preferred_element_type=jnp.float32)      # MXU: x @ P
        q = jnp.sum(x.astype(jnp.float32) * y, axis=1, keepdims=True)  # VPU mul + lane reduce
        o_ref[...] = q.astype(o_ref.dtype)
    return kernel


# ---------------------------------------------------------------------------
# Wrapper
# ---------------------------------------------------------------------------

def _cdiv(a, b):
    return (a + b - 1) // b


def _round_up(a, m):
    return _cdiv(a, m) * m


def _tpu_vmem_and_cores():
    """(per-TensorCore VMEM bytes, TensorCores per chip) with a safe fallback."""
    try:
        vmem = int(pltpu.get_tpu_info().vmem_capacity_bytes)
    except Exception:
        vmem = 64 << 20   # conservative (v7x-sized) fallback
    # Heuristic proxy: 64 MiB/TC parts (v7x) have 2 TensorCores/chip; 128 MiB parts have 1.
    # Only used to balance small grids, so a wrong guess is harmless.
    cores = 2 if vmem <= (64 << 20) else 1
    return vmem, cores


def quadratic_lyapunov(x, P, *, tb=None, use_bf16_matmul=False):
    """Compute sum(x * (x @ P), axis=1, keepdims=True) with a Pallas TPU kernel."""
    B, D = x.shape
    assert P.shape == (D, D)
    itemsize = jnp.dtype(x.dtype).itemsize

    vmem_cap, n_cores = _tpu_vmem_and_cores()
    budget = (vmem_cap * 3) // 4            # working-set target, leaves compiler headroom
    p_bytes = D * D * itemsize              # P is single-buffered (grid-invariant)

    if tb is None:
        # Size the batch tile by bytes (~4 MiB streams near the HBM roofline), capped by the
        # VMEM budget (x tiles are double-buffered) and by the batch itself.
        target_tile_bytes = 4 << 20
        x_budget = max(budget - p_bytes, 1 << 20)
        tb = min(target_tile_bytes // (D * itemsize),
                 x_budget // (2 * D * itemsize))
        tb = max(128, (int(tb) // 128) * 128)
        tb = min(tb, _round_up(B, 8))       # never tile (much) past the batch
        if n_cores > 1 and B > n_cores * 128:
            # v7x: keep the grid-step count a multiple of the core count when it is small,
            # so both TensorCores get equal work under dimension_semantics=("parallel",).
            steps = _cdiv(B, tb)
            if steps < 8 and steps % n_cores != 0:
                steps = _round_up(steps, n_cores)
                tb = max(128, _round_up(_cdiv(B, steps), 128))
    tb = max(8, _round_up(int(tb), 8))

    # No batch padding: Pallas masks out-of-bounds writes of the ragged last tile, and each
    # output row depends only on its own input row, so OOB input garbage never leaks.
    grid = (_cdiv(B, tb),)

    # Estimated VMEM use (double-buffered x + single-buffered P + slack), capped with headroom.
    est_usage = 2 * tb * D * itemsize + p_bytes + (4 << 20)
    vmem_limit = int(min(max(est_usage, 32 << 20), (vmem_cap * 7) // 8))

    out = pl.pallas_call(
        _make_kernel(use_bf16_matmul),
        out_shape=jax.ShapeDtypeStruct((B, 1), x.dtype),
        grid=grid,
        in_specs=[
            pl.BlockSpec((tb, D), lambda i: (i, 0)),                    # streamed x row tiles
            pl.BlockSpec((D, D), lambda i: (0, 0),
                         pipeline_mode=pl.Buffered(1)),                 # P resident, 1 buffer
        ],
        out_specs=pl.BlockSpec((tb, 1), lambda i: (i, 0)),
        compiler_params=pltpu.CompilerParams(
            dimension_semantics=("parallel",),
            vmem_limit_bytes=vmem_limit,
        ),
    )(x, P)
    return out


# ---------------------------------------------------------------------------
# Self-test
# ---------------------------------------------------------------------------

if __name__ == "__main__":
    key = jax.random.PRNGKey(0)
    kx, kp, kx2, kp2 = jax.random.split(key, 4)

    # Case 1: small feature dim (D < 128), tiny batch (exact-fit tile, no ragged tail).
    B, D = 8, 32
    x = jax.random.normal(kx, (B, D), dtype=jnp.float32)
    A = jax.random.normal(kp, (D, D), dtype=jnp.float32)
    P = A @ A.T / D + jnp.eye(D, dtype=jnp.float32)      # SPD, as a Lyapunov P would be

    out = jax.block_until_ready(quadratic_lyapunov(x, P))
    ref = jnp.sum(x * (x @ P), axis=1, keepdims=True)
    assert out.shape == (B, 1)
    assert jnp.allclose(out, ref, rtol=1e-5, atol=1e-4), (out, ref)

    # Case 2: D >= 128, batch not a multiple of the tile (exercises the masked ragged tile).
    B2, D2 = 200, 128
    x2 = jax.random.normal(kx2, (B2, D2), dtype=jnp.float32)
    A2 = jax.random.normal(kp2, (D2, D2), dtype=jnp.float32)
    P2 = A2 @ A2.T / D2 + jnp.eye(D2, dtype=jnp.float32)

    out2 = jax.block_until_ready(quadratic_lyapunov(x2, P2))
    ref2 = jnp.sum(
        x2 * jnp.dot(x2, P2, precision=jax.lax.Precision.HIGHEST),
        axis=1, keepdims=True)
    assert out2.shape == (B2, 1)
    assert jnp.allclose(out2, ref2, rtol=1e-4, atol=1e-3), (out2, ref2)

    print("KERNEL_OK")
</pallas_src>

<mosaic_0001>
module attributes {stable_mosaic.version = 11 : i64} {
  func.func @kernel(%arg0: i32, %arg1: memref<8x32xf32, #tpu.memory_space<vmem>>, %arg2: memref<32x32xf32, #tpu.memory_space<vmem>>, %arg3: memref<8x1xf32, #tpu.memory_space<vmem>>) attributes {dimension_semantics = [#tpu.dimension_semantics<parallel>], iteration_bounds = array<i64: 1>, scalar_prefetch = 0 : i64, scratch_operands = 0 : i64, tpu.core_type = #tpu.core_type<tc>, window_params = [{transform_indices = @transform_0, window_bounds = array<i64: 8, 32>}, {pipeline_mode = #tpu.pipeline_mode<synchronous>, transform_indices = @transform_1, window_bounds = array<i64: 32, 32>}, {transform_indices = @transform_2, window_bounds = array<i64: 8, 1>}]} {
    %c0 = arith.constant 0 : index
    %c0_0 = arith.constant 0 : index
    %0 = vector.load %arg1[%c0, %c0_0] : memref<8x32xf32, #tpu.memory_space<vmem>>, vector<8x32xf32>
    %c0_1 = arith.constant 0 : index
    %c0_2 = arith.constant 0 : index
    %1 = vector.load %arg2[%c0_1, %c0_2] : memref<32x32xf32, #tpu.memory_space<vmem>>, vector<32x32xf32>
    %cst = arith.constant dense<0.000000e+00> : vector<8x32xf32>
    %2 = tpu.matmul %0, %1, %cst {dimension_numbers = #tpu.dot_dimension_numbers<[1], [0], [0], [1], [0, 0, 1, 1], [], []>} : vector<8x32xf32>, vector<32x32xf32>, vector<8x32xf32> -> vector<8x32xf32>
    %3 = arith.mulf %0, %2 : vector<8x32xf32>
    %cst_3 = arith.constant dense<0.000000e+00> : vector<8xf32>
    %4 = vector.multi_reduction <add>, %3, %cst_3 [1] : vector<8x32xf32> to vector<8xf32>
    %5 = vector.shape_cast %4 : vector<8xf32> to vector<8x1xf32>
    %c0_4 = arith.constant 0 : index
    %c0_5 = arith.constant 0 : index
    %6 = vector.load %arg3[%c0_4, %c0_5] : memref<8x1xf32, #tpu.memory_space<vmem>>, vector<8x1xf32>
    tpu.vector_store %arg3[%c0_4, %c0_5], %5 {strides = array<i32>} : memref<8x1xf32, #tpu.memory_space<vmem>>, vector<8x1xf32>,
    return
  }
  func.func @transform_0(%arg0: i32) -> (i32, i32) {
    %c0_i32 = arith.constant 0 : i32
    %c0_i32_0 = arith.constant 0 : i32
    return %arg0, %c0_i32 : i32, i32
  }
  func.func @transform_1(%arg0: i32) -> (i32, i32) {
    %c0_i32 = arith.constant 0 : i32
    %c0_i32_0 = arith.constant 0 : i32
    %c0_i32_1 = arith.constant 0 : i32
    return %c0_i32, %c0_i32_0 : i32, i32
  }
  func.func @transform_2(%arg0: i32) -> (i32, i32) {
    %c0_i32 = arith.constant 0 : i32
    %c0_i32_0 = arith.constant 0 : i32
    return %arg0, %c0_i32 : i32, i32
  }
}

</mosaic_0001>

<bundles_post_ra>
// kernel: tpu_custom_call.1
= control target key start
LH: loop header
LB: loop body
LE: loop exit
PB: predicated region body
PF: predicated region fallthrough
CT: control target
= control target key end

     0   :  { %7 = vsyncpa [#allocation3], 0  ;;  %s225_s0 = inlined_call_operand.hbm [shape: f32[8,32], index: 0, kind: input, shape index: {}]   ;;  %s226_s1 = inlined_call_operand.hbm [shape: f32[32,32], index: 1, kind: input, shape index: {}]   ;;  %s227_s2 = inlined_call_operand.vmem [shape: f32[8,1], index: 2, kind: output, shape index: {}]  }
   0x1   :  { %8 = vsyncpa [#allocation5], 0  ;;  %s195_s9 = smov [#allocation2]   ;;  %s196_s11 = smov [#allocation4]  }
   0x2   :  { %s15_s10 = sshll.u32 %s195_s9, 4  ;;  %s24_s12 = sshll.u32 %s196_s11, 4  ;;  %s16_s10 = int_to_ptr.vmem [resolvable:$true] %s15_s10  ;;  %s25_s12 = int_to_ptr.vmem [resolvable:$true] %s24_s12 }
   0x3   :  { %s159_s13 = scalar_lea.vmem %s16_s10, 128  ;;  %p164_p1 = scmp.lt.s32.totalorder %s16_s10, %s16_s10 }
   0x4   :  { %p160_p0 = scmp.ne.s32.totalorder %s16_s10, %s159_s13  ;;  %p165_p2 = scmp.lt.s32.totalorder %s159_s13, %s159_s13 }
   0x6   :  { %p166_p3 = por %p165_p2, %p164_p1 }
   0x8   :  { %p167_p4 = pnand %p166_p3, %p160_p0 }
   0xa   :  { %170 = shalt.err (!%p167_p4)
}
   0xb   :  { %18 = dma.hbm_to_vmem [thread:$0]  %s225_s0, 128, %s16_s10, [#allocation3]  }
   0xc   :  { %s179_s16 = scalar_lea.vmem %s25_s12, 512  ;;  %p184_p6 = scmp.lt.s32.totalorder %s25_s12, %s25_s12 }
   0xd   :  { %p180_p5 = scmp.ne.s32.totalorder %s25_s12, %s179_s16  ;;  %p185_p7 = scmp.lt.s32.totalorder %s179_s16, %s179_s16 }
   0xf   :  { %p186_p8 = por %p185_p7, %p184_p6 }
  0x11   :  { %p187_p9 = pnand %p186_p8, %p180_p5 }
  0x13   :  { %190 = shalt.err (!%p187_p9)
}
  0x14   :  { %s197_s17 = smov 128   ;;  %s198_s18 = smov 8  }
  0x15   :  { %30 = dma.hbm_to_vmem [thread:$0]  %s226_s1, 512, %s25_s12, [#allocation5], %s197_s17, %s197_s17, %s198_s18  }
  0x16   :  { %191 = dma.done.wait [#allocation3], 128  }
  0x17   :  { %192 = vsyncadd [#allocation3], 4294967168 }
  0x18   :  { %193 = dma.done.wait [#allocation5], 512  }
  0x19   :  { %194 = vsyncadd [#allocation5], 4294966784  ;;  %v199_v0 = vmov 0.0   ;;  %vm200_vm0 = vmmov 0   ;;  %v41_v1 = vld [vmem:[#allocation4 + $0x18] sm:$0xff]  ;;  %v40_v2 = vld [vmem:[#allocation4 + $0x10] sm:$0xff] }
  0x1a   :  { %134 = vmatprep.subr.mxu0 %v199_v0  ;;  %142 = vmatprep.mubr.msk.f32.mxu0 %vm200_vm0, %v199_v0  ;;  %v39_v3 = vld [vmem:[#allocation4 + $0x8] sm:$0xff]  ;;  %v38_v4 = vld [vmem:[#allocation4] sm:$0xff]  ;;  %v37_v5 = vld [vmem:[#allocation2] sm:$0xff]  ;;  %vm42_vm1 = vcmask 261120   ;;  %vm120_vm2 = vcmask 7168  }
  0x1b   :  { %135 = vmatpush3.msra.mxu0 %v41_v1 }
  0x1c   :  { %136 = vmatprep.subr.mxu0 %v199_v0 }
  0x1d   :  { %137 = vmatpush3.msra.mxu0 %v40_v2 }
  0x1e   :  { %138 = vmatprep.subr.mxu0 %v199_v0 }
  0x1f   :  { %139 = vmatpush3.msra.mxu0 %v39_v3 }
  0x20   :  { %140 = vmatprep.subr.mxu0 %v199_v0 }
  0x21   :  { %141 = vmatpush3.msra.mxu0 %v38_v4 }
  0x22   :  { %143 = vmatmul.mubr.msk.f32.vlgmr.msra.gmra.mxu0 %vm42_vm1, %v37_v5 }
  0xe2   :  { %v112_v6 = vpop.f32.mrf.mxu0 }
  0xe3   :  { %v116_v7 = vmul.f32 %v112_v6, %v37_v5 }
  0xe4   :  { %v144_v8 = vpop.f32.mrf.mxu0 }
  0xe5   :  { %v117_v9 = vsel %vm42_vm1, %v116_v7, 0.0 }
  0xe6   :  { %118 = vadd.xlane.f32.xlu0 %v117_v9 }
 0x16f   :  { %v119_v10 = vpop.xlane.xlu0 %118 }
 0x170   :  { %121 = vst.msk [vmem:[%s227_s2] sm:$0xff] %vm120_vm2, %v119_v10 }
 0x171   :  { %126 = vsyncpa [#allocation3], 1 }
 0x172   :  { %127 = vsyncpa [#allocation5], 1 }

</bundles_post_ra>
